<compile_context>
chip_gen: v5e
topology: v5e:2x2
jax: 0.10.0
libtpu: 0.0.40
codegen_flags: <defaults>
</compile_context>

<pallas_src>
import jax
import jax.numpy as jnp
from jax.experimental import pallas as pl
from jax.experimental.pallas import tpu as pltpu


def _label_classifier_kernel(x_ref, w_ref, b_ref, o_ref):
    # x_ref: (F, TB) f32, batch on lanes.  w_ref: (F, 1).  b_ref: (1, 1).
    x = x_ref[...]                                        # (F, TB)
    w = w_ref[...]                                        # (F, 1) -> lane bcast
    # Logit difference d = l1 - l0 = x . (w1 - w0) + (b1 - b0)   -> (1, TB)
    d = jnp.sum(x * w, axis=0, keepdims=True) + b_ref[...]
    # Stable shared softplus pieces: softplus(t) = max(t, 0) + log1p(exp(-|t|))
    common = jnp.log1p(jnp.exp(-jnp.abs(d)))              # one exp, one log1p
    o_ref[0:1, :] = -(jnp.maximum(d, 0.0) + common)       # log P(class 0)
    o_ref[1:2, :] = -(jnp.maximum(-d, 0.0) + common)      # log P(class 1)


def _round_up(n, m):
    return ((n + m - 1) // m) * m


def label_classifier_forward(x, w, b, *, tb=8192):
    """Forward pass of LabelClassifier.

    x: (B, 15) float32
    w: (2, 15) float32  (PyTorch nn.Linear weight layout)
    b: (2,)    float32
    returns: (B, 2) float32 log-probabilities (== log_softmax(x @ w.T + b)).
    """
    B, F = x.shape
    assert w.shape == (2, F) and b.shape == (2,)

    # Batch tile: multiple of 128 lanes, capped by (lane-padded) batch size.
    tb = max(128, _round_up(min(tb, _round_up(B, 128)), 128))
    pad_b = _round_up(B, tb)
    grid = pad_b // tb

    # Lane-dense transposed input; pad batch up to a tile multiple.
    x_t = x.astype(jnp.float32).T                         # (F, B)
    if pad_b > B:
        x_t = jnp.pad(x_t, ((0, 0), (0, pad_b - B)))

    # 2-class reduction: only the difference row of the weight matters.
    w_diff = (w[1, :] - w[0, :]).astype(jnp.float32).reshape(F, 1)
    b_diff = (b[1] - b[0]).astype(jnp.float32).reshape(1, 1)

    out_t = pl.pallas_call(
        _label_classifier_kernel,
        out_shape=jax.ShapeDtypeStruct((2, pad_b), jnp.float32),
        grid_spec=pltpu.PrefetchScalarGridSpec(
            num_scalar_prefetch=0,
            grid=(grid,),
            in_specs=[
                pl.BlockSpec((F, tb), lambda i: (0, i)),   # x tile, lane-dense
                pl.BlockSpec((F, 1), lambda i: (0, 0)),    # constant -> resident
                pl.BlockSpec((1, 1), lambda i: (0, 0)),    # constant -> resident
            ],
            out_specs=pl.BlockSpec((2, tb), lambda i: (0, i)),
        ),
        compiler_params=pltpu.CompilerParams(
            dimension_semantics=("parallel",),             # shard tiles on v7x 2 TCs
            vmem_limit_bytes=32 * 1024 * 1024,             # explicit, fits all gens
        ),
        cost_estimate=pl.CostEstimate(
            flops=2 * pad_b * F + 8 * pad_b,
            transcendentals=2 * pad_b,
            bytes_accessed=pad_b * F * 4 + pad_b * 2 * 4 + F * 4 + 4,
        ),
    )(x_t, w_diff, b_diff)

    return out_t[:, :B].T                                  # (B, 2)


def init_params(key):
    """Deterministic init matching nn.Linear(15, 2) default (uniform +-1/sqrt(fan_in))."""
    in_f, out_f = 15, 2
    k_w, k_b = jax.random.split(key)
    bound = 1.0 / jnp.sqrt(jnp.float32(in_f))
    w = jax.random.uniform(k_w, (out_f, in_f), jnp.float32, -bound, bound)
    b = jax.random.uniform(k_b, (out_f,), jnp.float32, -bound, bound)
    return w, b


if __name__ == "__main__":
    key = jax.random.PRNGKey(0)
    k_params, k_x = jax.random.split(key)

    w, b = init_params(k_params)

    batch = 8
    x = jax.random.normal(k_x, (batch, 15), dtype=jnp.float32)

    out = label_classifier_forward(x, w, b)
    out = jax.block_until_ready(out)

    # Reference: same math as nn.Sequential(nn.Linear(15, 2), nn.LogSoftmax(dim=1)).
    logits_ref = x @ w.T + b
    ref = jax.nn.log_softmax(logits_ref, axis=1)
    assert out.shape == (batch, 2)
    assert jnp.allclose(out, ref, atol=1e-5, rtol=1e-5), (out, ref)

    print("KERNEL_OK")
</pallas_src>

<mosaic_0001>
module attributes {stable_mosaic.version = 11 : i64} {
  func.func @_label_classifier_kernel(%arg0: i32, %arg1: memref<15x128xf32, #tpu.memory_space<vmem>>, %arg2: memref<15x1xf32, #tpu.memory_space<vmem>>, %arg3: memref<1x1xf32, #tpu.memory_space<vmem>>, %arg4: memref<2x128xf32, #tpu.memory_space<vmem>>) attributes {dimension_semantics = [#tpu.dimension_semantics<parallel>], iteration_bounds = array<i64: 1>, scalar_prefetch = 0 : i64, scratch_operands = 0 : i64, tpu.core_type = #tpu.core_type<tc>, window_params = [{transform_indices = @transform_0, window_bounds = array<i64: 15, 128>}, {pipeline_mode = #tpu.pipeline_mode<synchronous>, transform_indices = @transform_1, window_bounds = array<i64: 15, 1>}, {pipeline_mode = #tpu.pipeline_mode<synchronous>, transform_indices = @transform_2, window_bounds = array<i64: 1, 1>}, {transform_indices = @transform_3, window_bounds = array<i64: 2, 128>}]} {
    %c0 = arith.constant 0 : index
    %c0_0 = arith.constant 0 : index
    %0 = vector.load %arg1[%c0, %c0_0] : memref<15x128xf32, #tpu.memory_space<vmem>>, vector<15x128xf32>
    %c0_1 = arith.constant 0 : index
    %c0_2 = arith.constant 0 : index
    %1 = vector.load %arg2[%c0_1, %c0_2] : memref<15x1xf32, #tpu.memory_space<vmem>>, vector<15x1xf32>
    %2 = vector.broadcast %1 : vector<15x1xf32> to vector<15x128xf32>
    %3 = arith.mulf %0, %2 : vector<15x128xf32>
    %cst = arith.constant dense<0.000000e+00> : vector<128xf32>
    %4 = vector.multi_reduction <add>, %3, %cst [0] : vector<15x128xf32> to vector<128xf32>
    %5 = vector.shape_cast %4 : vector<128xf32> to vector<1x128xf32>
    %c0_3 = arith.constant 0 : index
    %c0_4 = arith.constant 0 : index
    %6 = vector.load %arg3[%c0_3, %c0_4] : memref<1x1xf32, #tpu.memory_space<vmem>>, vector<1x1xf32>
    %7 = vector.broadcast %6 : vector<1x1xf32> to vector<1x128xf32>
    %8 = arith.addf %5, %7 : vector<1x128xf32>
    %9 = math.absf %8 : vector<1x128xf32>
    %cst_5 = arith.constant 0.000000e+00 : f32
    %10 = vector.broadcast %cst_5 : f32 to vector<1x128xf32>
    %11 = arith.subf %10, %9 : vector<1x128xf32>
    %12 = math.exp %11 : vector<1x128xf32>
    %13 = math.log1p %12 : vector<1x128xf32>
    %cst_6 = arith.constant 0.000000e+00 : f32
    %14 = vector.broadcast %cst_6 : f32 to vector<1x128xf32>
    %15 = arith.maximumf %8, %14 : vector<1x128xf32>
    %16 = arith.addf %15, %13 : vector<1x128xf32>
    %cst_7 = arith.constant 0.000000e+00 : f32
    %17 = vector.broadcast %cst_7 : f32 to vector<1x128xf32>
    %18 = arith.subf %17, %16 : vector<1x128xf32>
    %c0_8 = arith.constant 0 : index
    %c0_9 = arith.constant 0 : index
    %19 = vector.load %arg4[%c0_8, %c0_9] : memref<2x128xf32, #tpu.memory_space<vmem>>, vector<1x128xf32>
    tpu.vector_store %arg4[%c0_8, %c0_9], %18 {strides = array<i32>} : memref<2x128xf32, #tpu.memory_space<vmem>>, vector<1x128xf32>,
    %cst_10 = arith.constant 0.000000e+00 : f32
    %20 = vector.broadcast %cst_10 : f32 to vector<1x128xf32>
    %21 = arith.subf %20, %8 : vector<1x128xf32>
    %cst_11 = arith.constant 0.000000e+00 : f32
    %22 = vector.broadcast %cst_11 : f32 to vector<1x128xf32>
    %23 = arith.maximumf %21, %22 : vector<1x128xf32>
    %24 = arith.addf %23, %13 : vector<1x128xf32>
    %cst_12 = arith.constant 0.000000e+00 : f32
    %25 = vector.broadcast %cst_12 : f32 to vector<1x128xf32>
    %26 = arith.subf %25, %24 : vector<1x128xf32>
    %c1 = arith.constant 1 : index
    %c0_13 = arith.constant 0 : index
    %27 = vector.load %arg4[%c1, %c0_13] : memref<2x128xf32, #tpu.memory_space<vmem>>, vector<1x128xf32>
    tpu.vector_store %arg4[%c1, %c0_13], %26 {strides = array<i32>} : memref<2x128xf32, #tpu.memory_space<vmem>>, vector<1x128xf32>,
    return
  }
  func.func @transform_0(%arg0: i32) -> (i32, i32) {
    %c0_i32 = arith.constant 0 : i32
    %c0_i32_0 = arith.constant 0 : i32
    return %c0_i32, %arg0 : i32, i32
  }
  func.func @transform_1(%arg0: i32) -> (i32, i32) {
    %c0_i32 = arith.constant 0 : i32
    %c0_i32_0 = arith.constant 0 : i32
    %c0_i32_1 = arith.constant 0 : i32
    return %c0_i32, %c0_i32_0 : i32, i32
  }
  func.func @transform_2(%arg0: i32) -> (i32, i32) {
    %c0_i32 = arith.constant 0 : i32
    %c0_i32_0 = arith.constant 0 : i32
    %c0_i32_1 = arith.constant 0 : i32
    return %c0_i32, %c0_i32_0 : i32, i32
  }
  func.func @transform_3(%arg0: i32) -> (i32, i32) {
    %c0_i32 = arith.constant 0 : i32
    %c0_i32_0 = arith.constant 0 : i32
    return %c0_i32, %arg0 : i32, i32
  }
}

</mosaic_0001>

<bundles_post_ra>
// kernel: tpu_custom_call.1
= control target key start
LH: loop header
LB: loop body
LE: loop exit
PB: predicated region body
PF: predicated region fallthrough
CT: control target
= control target key end

     0   :  { %s162_s0 = inlined_call_operand.vmem [shape: f32[15,128], index: 0, kind: input, shape index: {}]   ;;  %s163_s1 = inlined_call_operand.vmem [shape: f32[15,1], index: 1, kind: input, shape index: {}]   ;;  %s164_s2 = inlined_call_operand.<no memory space> [shape: f32[1,1], index: 2, kind: input, shape index: {}]   ;;  %s165_s3 = inlined_call_operand.hbm [shape: f32[2,128], index: 3, kind: output, shape index: {}]  }
   0x1   :  { %v8_v0 = vstv %s164_s2 }
   0x2   :  { %9 = vst [vmem:[#allocation2] sm:$0x1] %v8_v0 }
   0x3   :  { %v20_v1 = vld [vmem:[%s163_s1 + $0x8] sm:$0x7f]  ;;  %v122_v3 = vmov 0  }
   0x4   :  { %90 = vset.pattern.permute.xlu0 %v122_v3  ;;  %91 = vset.pattern.permute.xlu1 %v122_v3 }
   0x9   :  { %v42_v2 = vld [vmem:[#allocation2] sm:$0x1] }
   0xa   :  { %10 = vsyncpa [#allocation4], 0  ;;  %28 = vperm.xlu0 %90, %v20_v1   ;;  %45 = vperm.xlu1 %91, %v42_v2   ;;  %v19_v4 = vld [vmem:[%s163_s1] sm:$0xff]  ;;  %v18_v6 = vld [vmem:[%s162_s0 + $0x8] sm:$0x7f]  ;;  %vm33_vm0 = vcmask 1046528  }
   0xb   :  { %v17_v8 = vld [vmem:[%s162_s0] sm:$0xff]  ;;  %s123_s0 = smov [#allocation3]   ;;  %s79_s23 = sshll.u32 %s165_s3, 4  ;;  %s80_s23 = int_to_ptr.hbm [resolvable:$true] %s79_s23 }
   0xc   :  { %s77_s1 = sshll.u32 %s123_s0, 4  ;;  %s78_s1 = int_to_ptr.vmem [resolvable:$true] %s77_s1 }
  0x12   :  { %23 = vperm.xlu0 %90, %v19_v4  }
  0x7c   :  { %v29_v5 = vpop.permute.xlu0 %28  ;;  %v46_v16 = vpop.permute.xlu1 %45 }
  0x7d   :  { %v32_v7 = vmul.f32 %v29_v5, %v18_v6  ;;  %v48_v19 = vperm.slane %v46_v16, 0 }
  0x7f   :  { %v34_v11 = vsel %vm33_vm0, %v32_v7, 0.0 }
  0x84   :  { %v24_v9 = vpop.permute.xlu0 %23 }
  0x85   :  { %v31_v10 = vmul.f32 %v24_v9, %v17_v8 }
  0x87   :  { %v35_v12 = vadd.f32 %v34_v11, %v31_v10 }
  0x89   :  { %v36_v13 = vrot.slane %v35_v12, 4 }
  0x8b   :  { %v37_v14 = vadd.f32 %v36_v13, %v35_v12 }
  0x8d   :  { %v38_v15 = vrot.slane %v37_v14, 2 }
  0x8f   :  { %v39_v17 = vadd.f32 %v38_v15, %v37_v14 }
  0x91   :  { %v40_v18 = vrot.slane %v39_v17, 1 }
  0x93   :  { %v41_v20 = vadd.f32 %v40_v18, %v39_v17 }
  0x95   :  { %v49_v21 = vadd.f32 %v48_v19, %v41_v20 }
  0x97   :  { %v50_v22 = vand.u32 2147483647, %v49_v21  ;;  %v67_v29 = vsub.f32 0.0, %v49_v21  ;;  %v63_v34 = vmax.f32 %v49_v21, 0.0 }
  0x99   :  { %v51_v23 = vsub.f32 0.0, %v50_v22  ;;  %v68_v35 = vmax.f32 %v67_v29, 0.0 }
  0x9b   :  { %v52_v24 = vmul.f32 1.442695, %v51_v23 }
  0x9d   :  { %92 = vpow2.f32 %v52_v24 }
  0xa3   :  { %v93_v25 = vpop.eup %92 }
  0xa4   :  { %v54_v26 = vadd.f32 1.0, %v93_v25  ;;  %v57_v27 = vmul.f32 -0.5, %v93_v25  ;;  %v60_v30 = vand.u32 2147483647, %v93_v25 }
  0xa6   :  { %94 = vlog2.f32 %v54_v26  ;;  %v58_v28 = vadd.f32 1.0, %v57_v27  ;;  %vm61_vm1 = vcmp.lt.f32.partialorder %v60_v30, 0.0004427343 }
  0xa8   :  { %v59_v33 = vmul.f32 %v93_v25, %v58_v28 }
  0xac   :  { %v95_v31 = vpop.eup %94 }
  0xad   :  { %v56_v32 = vmul.f32 0.6931472, %v95_v31 }
  0xaf   :  { %v62_v36 = vsel %vm61_vm1, %v59_v33, %v56_v32 }
  0xb0   :  { %v64_v37 = vadd.f32 %v63_v34, %v62_v36  ;;  %v69_v38 = vadd.f32 %v68_v35, %v62_v36 }
  0xb2   :  { %v65_v39 = vsub.f32 0.0, %v64_v37  ;;  %v70_v40 = vsub.f32 0.0, %v69_v38 }
  0xb4   :  { %66 = vst [vmem:[#allocation3] sm:$0x1] %v65_v39 }
  0xb5   :  { %71 = vst [vmem:[#allocation3 + $0x1] sm:$0x1] %v70_v40 }
  0xb6   :  { %82 = dma.vmem_to_hbm [thread:$0]  %s78_s1, 32, %s80_s23, [#allocation4]  }
  0xb7   :  { %120 = dma.done.wait [#allocation4], 32  }
  0xb8   :  { %121 = vsyncadd [#allocation4], 4294967264 }
  0xb9   :  { %87 = vsyncpa [#allocation4], 1 }

</bundles_post_ra>
